<compile_context>
chip_gen: v7x
topology: tpu7x:2x2x1
jax: 0.10.0
libtpu: 0.0.40
codegen_flags: <defaults>
</compile_context>

<pallas_src>
import math
from functools import partial

import jax
import jax.numpy as jnp
from jax import lax
from jax.experimental import pallas as pl
from jax.experimental.pallas import tpu as pltpu


def _round_up(x, m):
    return ((x + m - 1) // m) * m


def _flash_attn_kernel(valid_lens_ref, q_ref, k_ref, v_ref, o_ref,
                       m_sc, l_sc, acc_sc, *, scale, k_len):
    # valid_lens_ref: SMEM (B,) int32  (scalar-prefetched)
    # q_ref: (1, tq, Dp), k_ref: (1, tk, Dp), v_ref: (1, tk, Vp), o_ref: (1, tq, Vp)
    # scratch: m_sc/l_sc (tq, 1) fp32, acc_sc (tq, Vp) fp32
    b = pl.program_id(0)
    ki = pl.program_id(2)

    @pl.when(ki == 0)
    def _():
        m_sc[...] = jnp.full_like(m_sc, -jnp.inf)
        l_sc[...] = jnp.zeros_like(l_sc)
        acc_sc[...] = jnp.zeros_like(acc_sc)

    q = q_ref[0]                      # (tq, Dp)
    k = k_ref[0]                      # (tk, Dp)
    v = v_ref[0]                      # (tk, Vp)

    # scores = q @ k^T / sqrt(D)  -- contract over D of both operands (no .T)
    s = lax.dot_general(q, k, dimension_numbers=(((1,), (1,)), ((), ())),
                        preferred_element_type=jnp.float32) * scale   # (tq, tk)

    tk = s.shape[-1]
    col = ki * tk + lax.broadcasted_iota(jnp.int32, s.shape, dimension=1)
    valid_len = valid_lens_ref[b]
    # d2l sequence_mask: positions >= valid_len -> -1e6 (matches reference exactly;
    # exp(-1e6 - m) underflows to 0, so these do not contribute to the denominator).
    s = jnp.where(col < valid_len, s, jnp.float32(-1.0e6))
    # K-padding columns (introduced by lane/tile padding) must not contribute to
    # the softmax denominator at all -> mask to -inf (exp -> 0 exactly).
    s = jnp.where(col < k_len, s, -jnp.inf)

    # online softmax update
    m_prev = m_sc[...]
    m_new = jnp.maximum(m_prev, jnp.max(s, axis=-1, keepdims=True))
    alpha = jnp.exp(m_prev - m_new)
    p = jnp.exp(s - m_new)
    l_sc[...] = alpha * l_sc[...] + jnp.sum(p, axis=-1, keepdims=True)
    acc_sc[...] = alpha * acc_sc[...] + jnp.dot(
        p.astype(v.dtype), v, preferred_element_type=jnp.float32)
    m_sc[...] = m_new

    @pl.when(ki == pl.num_programs(2) - 1)
    def _():
        # Exact normalization: tq exact divides + tq*Vp multiplies.
        inv_l = 1.0 / l_sc[...]
        o_ref[0] = (acc_sc[...] * inv_l).astype(o_ref.dtype)


def dot_product_attention(queries, keys, values, valid_lens=None,
                          *, tq_max=128, tk_max=512):
    """queries (B,Q,D), keys (B,K,D), values (B,K,V), valid_lens (B,) int or None."""
    B, Q, D = queries.shape
    _, K, _ = keys.shape
    V = values.shape[-1]
    out_dtype = queries.dtype

    if valid_lens is None:
        valid_lens = jnp.full((B,), K, dtype=jnp.int32)
    # TODO(synk): per-query (B, Q) valid_lens (also accepted by d2l) not supported here.
    valid_lens = valid_lens.astype(jnp.int32)

    # Lane-dense padding for the MXU / store path; tile sizes for Q/K.
    Dp = _round_up(D, 128)
    Vp = _round_up(V, 128)
    tq = min(tq_max, _round_up(Q, 8))
    tk = min(tk_max, _round_up(K, 8))
    Qp = _round_up(Q, tq)
    Kp = _round_up(K, tk)

    qp = jnp.pad(queries, ((0, 0), (0, Qp - Q), (0, Dp - D)))
    kp = jnp.pad(keys, ((0, 0), (0, Kp - K), (0, Dp - D)))
    vp = jnp.pad(values, ((0, 0), (0, Kp - K), (0, Vp - V)))

    grid = (B, Qp // tq, Kp // tk)
    kernel = partial(_flash_attn_kernel, scale=1.0 / math.sqrt(D), k_len=K)

    grid_spec = pltpu.PrefetchScalarGridSpec(
        num_scalar_prefetch=1,
        grid=grid,
        in_specs=[
            pl.BlockSpec((1, tq, Dp), lambda b, qi, ki, vl: (b, qi, 0)),
            pl.BlockSpec((1, tk, Dp), lambda b, qi, ki, vl: (b, ki, 0)),
            pl.BlockSpec((1, tk, Vp), lambda b, qi, ki, vl: (b, ki, 0)),
        ],
        out_specs=pl.BlockSpec((1, tq, Vp), lambda b, qi, ki, vl: (b, qi, 0)),
        scratch_shapes=[
            pltpu.VMEM((tq, 1), jnp.float32),   # running max
            pltpu.VMEM((tq, 1), jnp.float32),   # running denom
            pltpu.VMEM((tq, Vp), jnp.float32),  # running numerator
        ],
    )

    out = pl.pallas_call(
        kernel,
        out_shape=jax.ShapeDtypeStruct((B, Qp, Vp), out_dtype),
        grid_spec=grid_spec,
        compiler_params=pltpu.CompilerParams(
            dimension_semantics=("parallel", "parallel", "arbitrary"),
            vmem_limit_bytes=64 * 1024 * 1024,
        ),
    )(valid_lens, qp, kp, vp)

    return out[:, :Q, :V]


def _reference(queries, keys, values, valid_lens):
    d = queries.shape[-1]
    scores = jnp.einsum("bqd,bkd->bqk", queries, keys) / math.sqrt(d)
    col = jnp.arange(scores.shape[-1])[None, None, :]
    mask = col < valid_lens[:, None, None]
    scores = jnp.where(mask, scores, -1000000.0)
    w = jax.nn.softmax(scores, axis=-1)
    return jnp.einsum("bqk,bkv->bqv", w, values)


if __name__ == "__main__":
    key = jax.random.PRNGKey(0)

    # --- Test 1: the exact d2l example shapes ---
    B, Q, K, D, V = 2, 1, 10, 2, 4
    queries = jax.random.normal(key, (B, Q, D), dtype=jnp.float32)
    keys = jax.random.normal(jax.random.fold_in(key, 1), (B, K, D), dtype=jnp.float32)
    values = jnp.tile(jnp.arange(40, dtype=jnp.float32).reshape(1, K, V), (B, 1, 1))
    valid_lens = jnp.array([2, 6], dtype=jnp.int32)

    out = dot_product_attention(queries, keys, values, valid_lens)
    out = jax.block_until_ready(out)
    ref = _reference(queries, keys, values, valid_lens)
    assert out.shape == (B, Q, V), out.shape
    assert jnp.allclose(out, ref, atol=1e-4, rtol=1e-4), (out, ref)

    # --- Test 2: exercise the Q/K tiling + online softmax (multiple K tiles) ---
    B2, Q2, K2, D2, V2 = 2, 16, 40, 32, 64
    q2 = jax.random.normal(jax.random.fold_in(key, 2), (B2, Q2, D2), dtype=jnp.float32)
    k2 = jax.random.normal(jax.random.fold_in(key, 3), (B2, K2, D2), dtype=jnp.float32)
    v2 = jax.random.normal(jax.random.fold_in(key, 4), (B2, K2, V2), dtype=jnp.float32)
    vl2 = jnp.array([7, 33], dtype=jnp.int32)

    out2 = dot_product_attention(q2, k2, v2, vl2, tq_max=8, tk_max=16)
    out2 = jax.block_until_ready(out2)
    ref2 = _reference(q2, k2, v2, vl2)
    assert out2.shape == (B2, Q2, V2), out2.shape
    assert jnp.allclose(out2, ref2, atol=1e-4, rtol=1e-4), jnp.max(jnp.abs(out2 - ref2))

    # --- Test 3: valid_lens = None path (plain softmax over all keys) ---
    out3 = dot_product_attention(q2, k2, v2, None)
    out3 = jax.block_until_ready(out3)
    ref3 = _reference(q2, k2, v2, jnp.full((B2,), K2, dtype=jnp.int32))
    assert jnp.allclose(out3, ref3, atol=1e-4, rtol=1e-4), jnp.max(jnp.abs(out3 - ref3))

    print("KERNEL_OK")
</pallas_src>

<mosaic_0001>
module attributes {stable_mosaic.version = 11 : i64} {
  func.func @_flash_attn_kernel(%arg0: i32, %arg1: i32, %arg2: i32, %arg3: memref<2xi32, #tpu.memory_space<smem>>, %arg4: memref<1x8x128xf32, #tpu.memory_space<vmem>>, %arg5: memref<1x16x128xf32, #tpu.memory_space<vmem>>, %arg6: memref<1x16x128xf32, #tpu.memory_space<vmem>>, %arg7: memref<1x8x128xf32, #tpu.memory_space<vmem>>, %arg8: memref<8x1xf32, #tpu.memory_space<vmem>>, %arg9: memref<8x1xf32, #tpu.memory_space<vmem>>, %arg10: memref<8x128xf32, #tpu.memory_space<vmem>>) attributes {dimension_semantics = [#tpu.dimension_semantics<parallel>, #tpu.dimension_semantics<parallel>, #tpu.dimension_semantics<arbitrary>], iteration_bounds = array<i64: 2, 1, 1>, scalar_prefetch = 1 : i64, scratch_operands = 3 : i64, tpu.core_type = #tpu.core_type<tc>, window_params = [{transform_indices = @transform_0, window_bounds = array<i64: 1, 8, 128>}, {transform_indices = @transform_1, window_bounds = array<i64: 1, 16, 128>}, {transform_indices = @transform_2, window_bounds = array<i64: 1, 16, 128>}, {transform_indices = @transform_3, window_bounds = array<i64: 1, 8, 128>}]} {
    %c0_i32 = arith.constant 0 : i32
    %0 = arith.cmpi eq, %arg2, %c0_i32 : i32
    %1 = arith.extui %0 : i1 to i32
    %c0_i32_0 = arith.constant 0 : i32
    %2 = arith.cmpi ne, %1, %c0_i32_0 : i32
    scf.if %2 {
      %cst_29 = arith.constant 0xFF800000 : f32
      %51 = vector.broadcast %cst_29 : f32 to vector<8x1xf32>
      %c0_30 = arith.constant 0 : index
      %c0_31 = arith.constant 0 : index
      %52 = vector.load %arg8[%c0_30, %c0_31] : memref<8x1xf32, #tpu.memory_space<vmem>>, vector<8x1xf32>
      tpu.vector_store %arg8[%c0_30, %c0_31], %51 {strides = array<i32>} : memref<8x1xf32, #tpu.memory_space<vmem>>, vector<8x1xf32>,
      %cst_32 = arith.constant 0.000000e+00 : f32
      %53 = vector.broadcast %cst_32 : f32 to vector<8x1xf32>
      %c0_33 = arith.constant 0 : index
      %c0_34 = arith.constant 0 : index
      %54 = vector.load %arg9[%c0_33, %c0_34] : memref<8x1xf32, #tpu.memory_space<vmem>>, vector<8x1xf32>
      tpu.vector_store %arg9[%c0_33, %c0_34], %53 {strides = array<i32>} : memref<8x1xf32, #tpu.memory_space<vmem>>, vector<8x1xf32>,
      %cst_35 = arith.constant 0.000000e+00 : f32
      %55 = vector.broadcast %cst_35 : f32 to vector<8x128xf32>
      %c0_36 = arith.constant 0 : index
      %c0_37 = arith.constant 0 : index
      %56 = vector.load %arg10[%c0_36, %c0_37] : memref<8x128xf32, #tpu.memory_space<vmem>>, vector<8x128xf32>
      tpu.vector_store %arg10[%c0_36, %c0_37], %55 {strides = array<i32>} : memref<8x128xf32, #tpu.memory_space<vmem>>, vector<8x128xf32>,
    } else {
    }
    %c0 = arith.constant 0 : index
    %c0_1 = arith.constant 0 : index
    %c0_2 = arith.constant 0 : index
    %3 = vector.load %arg4[%c0, %c0_1, %c0_2] : memref<1x8x128xf32, #tpu.memory_space<vmem>>, vector<1x8x128xf32>
    %4 = vector.shape_cast %3 : vector<1x8x128xf32> to vector<8x128xf32>
    %c0_3 = arith.constant 0 : index
    %c0_4 = arith.constant 0 : index
    %c0_5 = arith.constant 0 : index
    %5 = vector.load %arg5[%c0_3, %c0_4, %c0_5] : memref<1x16x128xf32, #tpu.memory_space<vmem>>, vector<1x16x128xf32>
    %6 = vector.shape_cast %5 : vector<1x16x128xf32> to vector<16x128xf32>
    %c0_6 = arith.constant 0 : index
    %c0_7 = arith.constant 0 : index
    %c0_8 = arith.constant 0 : index
    %7 = vector.load %arg6[%c0_6, %c0_7, %c0_8] : memref<1x16x128xf32, #tpu.memory_space<vmem>>, vector<1x16x128xf32>
    %8 = vector.shape_cast %7 : vector<1x16x128xf32> to vector<16x128xf32>
    %cst = arith.constant dense<0.000000e+00> : vector<8x16xf32>
    %9 = tpu.matmul %4, %6, %cst {dimension_numbers = #tpu.dot_dimension_numbers<[1], [1], [0], [0], [0, 0, 1, 0], [], []>} : vector<8x128xf32>, vector<16x128xf32>, vector<8x16xf32> -> vector<8x16xf32>
    %cst_9 = arith.constant 0.707106769 : f32
    %10 = vector.broadcast %cst_9 : f32 to vector<8x16xf32>
    %11 = arith.mulf %9, %10 : vector<8x16xf32>
    %c16_i32 = arith.constant 16 : i32
    %12 = arith.muli %arg2, %c16_i32 : i32
    %13 = tpu.iota {dimensions = array<i32: 1>} : vector<8x16xi32>
    %14 = vector.broadcast %12 : i32 to vector<8x16xi32>
    %15 = arith.addi %14, %13 : vector<8x16xi32>
    %16 = arith.index_cast %arg0 : i32 to index
    %17 = memref.load %arg3[%16] : memref<2xi32, #tpu.memory_space<smem>>
    %18 = vector.broadcast %17 : i32 to vector<8x16xi32>
    %19 = arith.cmpi slt, %15, %18 : vector<8x16xi32>
    %cst_10 = arith.constant -1.000000e+06 : f32
    %20 = vector.broadcast %cst_10 : f32 to vector<8x16xf32>
    %21 = arith.select %19, %11, %20 : vector<8x16xi1>, vector<8x16xf32>
    %c10_i32 = arith.constant 10 : i32
    %22 = vector.broadcast %c10_i32 : i32 to vector<8x16xi32>
    %23 = arith.cmpi slt, %15, %22 : vector<8x16xi32>
    %cst_11 = arith.constant 0xFF800000 : f32
    %24 = vector.broadcast %cst_11 : f32 to vector<8x16xf32>
    %25 = arith.select %23, %21, %24 : vector<8x16xi1>, vector<8x16xf32>
    %c0_12 = arith.constant 0 : index
    %c0_13 = arith.constant 0 : index
    %26 = vector.load %arg8[%c0_12, %c0_13] : memref<8x1xf32, #tpu.memory_space<vmem>>, vector<8x1xf32>
    %cst_14 = arith.constant dense<0xFF800000> : vector<8xf32>
    %27 = vector.multi_reduction <maximumf>, %25, %cst_14 [1] : vector<8x16xf32> to vector<8xf32>
    %28 = vector.shape_cast %27 : vector<8xf32> to vector<8x1xf32>
    %29 = arith.maximumf %26, %28 : vector<8x1xf32>
    %30 = arith.subf %26, %29 : vector<8x1xf32>
    %31 = math.exp %30 : vector<8x1xf32>
    %32 = vector.broadcast %29 : vector<8x1xf32> to vector<8x16xf32>
    %33 = arith.subf %25, %32 : vector<8x16xf32>
    %34 = math.exp %33 : vector<8x16xf32>
    %c0_15 = arith.constant 0 : index
    %c0_16 = arith.constant 0 : index
    %35 = vector.load %arg9[%c0_15, %c0_16] : memref<8x1xf32, #tpu.memory_space<vmem>>, vector<8x1xf32>
    %36 = arith.mulf %31, %35 : vector<8x1xf32>
    %cst_17 = arith.constant dense<0.000000e+00> : vector<8xf32>
    %37 = vector.multi_reduction <add>, %34, %cst_17 [1] : vector<8x16xf32> to vector<8xf32>
    %38 = vector.shape_cast %37 : vector<8xf32> to vector<8x1xf32>
    %39 = arith.addf %36, %38 : vector<8x1xf32>
    %c0_18 = arith.constant 0 : index
    %c0_19 = arith.constant 0 : index
    %40 = vector.load %arg9[%c0_18, %c0_19] : memref<8x1xf32, #tpu.memory_space<vmem>>, vector<8x1xf32>
    tpu.vector_store %arg9[%c0_18, %c0_19], %39 {strides = array<i32>} : memref<8x1xf32, #tpu.memory_space<vmem>>, vector<8x1xf32>,
    %c0_20 = arith.constant 0 : index
    %c0_21 = arith.constant 0 : index
    %41 = vector.load %arg10[%c0_20, %c0_21] : memref<8x128xf32, #tpu.memory_space<vmem>>, vector<8x128xf32>
    %42 = vector.broadcast %31 : vector<8x1xf32> to vector<8x128xf32>
    %43 = arith.mulf %42, %41 : vector<8x128xf32>
    %cst_22 = arith.constant dense<0.000000e+00> : vector<8x128xf32>
    %44 = tpu.matmul %34, %8, %cst_22 {dimension_numbers = #tpu.dot_dimension_numbers<[1], [0], [0], [1], [0, 0, 1, 1], [], []>} : vector<8x16xf32>, vector<16x128xf32>, vector<8x128xf32> -> vector<8x128xf32>
    %45 = arith.addf %43, %44 : vector<8x128xf32>
    %c0_23 = arith.constant 0 : index
    %c0_24 = arith.constant 0 : index
    %46 = vector.load %arg10[%c0_23, %c0_24] : memref<8x128xf32, #tpu.memory_space<vmem>>, vector<8x128xf32>
    tpu.vector_store %arg10[%c0_23, %c0_24], %45 {strides = array<i32>} : memref<8x128xf32, #tpu.memory_space<vmem>>, vector<8x128xf32>,
    %c0_25 = arith.constant 0 : index
    %c0_26 = arith.constant 0 : index
    %47 = vector.load %arg8[%c0_25, %c0_26] : memref<8x1xf32, #tpu.memory_space<vmem>>, vector<8x1xf32>
    tpu.vector_store %arg8[%c0_25, %c0_26], %29 {strides = array<i32>} : memref<8x1xf32, #tpu.memory_space<vmem>>, vector<8x1xf32>,
    %c0_i32_27 = arith.constant 0 : i32
    %48 = arith.cmpi eq, %arg2, %c0_i32_27 : i32
    %49 = arith.extui %48 : i1 to i32
    %c0_i32_28 = arith.constant 0 : i32
    %50 = arith.cmpi ne, %49, %c0_i32_28 : i32
    scf.if %50 {
      %c0_29 = arith.constant 0 : index
      %c0_30 = arith.constant 0 : index
      %51 = vector.load %arg9[%c0_29, %c0_30] : memref<8x1xf32, #tpu.memory_space<vmem>>, vector<8x1xf32>
      %cst_31 = arith.constant 1.000000e+00 : f32
      %52 = vector.broadcast %cst_31 : f32 to vector<8x1xf32>
      %53 = arith.divf %52, %51 : vector<8x1xf32>
      %c0_32 = arith.constant 0 : index
      %c0_33 = arith.constant 0 : index
      %54 = vector.load %arg10[%c0_32, %c0_33] : memref<8x128xf32, #tpu.memory_space<vmem>>, vector<8x128xf32>
      %55 = vector.broadcast %53 : vector<8x1xf32> to vector<8x128xf32>
      %56 = arith.mulf %54, %55 : vector<8x128xf32>
      %c0_34 = arith.constant 0 : index
      %c0_35 = arith.constant 0 : index
      %c0_36 = arith.constant 0 : index
      %57 = vector.load %arg7[%c0_34, %c0_35, %c0_36] : memref<1x8x128xf32, #tpu.memory_space<vmem>>, vector<1x8x128xf32>
      %58 = vector.shape_cast %57 : vector<1x8x128xf32> to vector<8x128xf32>
      %59 = vector.shape_cast %56 : vector<8x128xf32> to vector<1x8x128xf32>
      tpu.vector_store %arg7[%c0_34, %c0_35, %c0_36], %59 {strides = array<i32>} : memref<1x8x128xf32, #tpu.memory_space<vmem>>, vector<1x8x128xf32>,
    } else {
    }
    return
  }
  func.func @transform_0(%arg0: i32, %arg1: i32, %arg2: i32, %arg3: memref<2xi32, #tpu.memory_space<smem>>) -> (i32, i32, i32) {
    %c0_i32 = arith.constant 0 : i32
    %c0_i32_0 = arith.constant 0 : i32
    return %arg0, %arg1, %c0_i32 : i32, i32, i32
  }
  func.func @transform_1(%arg0: i32, %arg1: i32, %arg2: i32, %arg3: memref<2xi32, #tpu.memory_space<smem>>) -> (i32, i32, i32) {
    %c0_i32 = arith.constant 0 : i32
    %c0_i32_0 = arith.constant 0 : i32
    return %arg0, %arg2, %c0_i32 : i32, i32, i32
  }
  func.func @transform_2(%arg0: i32, %arg1: i32, %arg2: i32, %arg3: memref<2xi32, #tpu.memory_space<smem>>) -> (i32, i32, i32) {
    %c0_i32 = arith.constant 0 : i32
    %c0_i32_0 = arith.constant 0 : i32
    return %arg0, %arg2, %c0_i32 : i32, i32, i32
  }
  func.func @transform_3(%arg0: i32, %arg1: i32, %arg2: i32, %arg3: memref<2xi32, #tpu.memory_space<smem>>) -> (i32, i32, i32) {
    %c0_i32 = arith.constant 0 : i32
    %c0_i32_0 = arith.constant 0 : i32
    return %arg0, %arg1, %c0_i32 : i32, i32, i32
  }
}

</mosaic_0001>

<bundles_post_ra>
// kernel: tpu_custom_call.1
= control target key start
LH: loop header
LB: loop body
LE: loop exit
PB: predicated region body
PF: predicated region fallthrough
CT: control target
= control target key end

     0   :  { %s1320_s0 = inlined_call_operand.hbm [shape: s32[2], index: 0, kind: input, shape index: {}]   ;;  %s1321_s1 = inlined_call_operand.hbm [shape: f32[2,8,128], index: 1, kind: input, shape index: {}]   ;;  %s1322_s2 = inlined_call_operand.hbm [shape: f32[2,16,128], index: 2, kind: input, shape index: {}]   ;;  %s1323_s3 = inlined_call_operand.hbm [shape: f32[2,16,128], index: 3, kind: input, shape index: {}]   ;;  %s1324_s4 = inlined_call_operand.hbm [shape: f32[2,8,128], index: 4, kind: output, shape index: {}]  }
   0x1   :  { %1332 = sst [smem:[#allocation21_spill]] %s1322_s2  ;;  %s804_s17 = scalar_lea.hbm %s1320_s0, 16 }
   0x2   :  { %p805_p0 = scmp.ne.s32.totalorder %s1320_s0, %s804_s17  ;;  %p808_p1 = scmp.lt.u32.totalorder %s804_s17, %s1320_s0 }
   0x4   :  { %p810_p2 = pnand %p808_p1, %p805_p0 }
   0x6   :  { %813 = shalt.err (!%p810_p2)  }
   0x7   :  { %s994_s22 = smov [#allocation6]  }
   0x8   :  { %10 = dma.hbm_to_smem %s1320_s0, 16, %s994_s22, [#allocation5] }
   0x9   :  { %956 = dma.done.wait [#allocation5], 16 }
   0xa   :  { %957 = vsyncadd [#allocation5], 4294967280 }
   0xb   :  { %12 = sfence }
   0xc   :  { %13 = vsyncpa [#allocation8], 0 }
   0xd   :  { %15 = vsyncpa [#allocation8 + $0x1], 0 }
   0xe   :  { %16 = vsyncpa [#allocation11], 0 }
   0xf   :  { %18 = vsyncpa [#allocation11 + $0x1], 0 }
  0x10   :  { %19 = vsyncpa [#allocation9], 0 }
  0x11   :  { %21 = vsyncpa [#allocation9 + $0x1], 0  ;;  %s1043_s25 = smov 0   ;;  %s1045_s26 = smov 0  }
  0x12   :  { %s1047_s27 = smov 0   ;;  %s1049_s28 = smov 0  }
  0x13   :  { %s1051_s29 = smov 0   ;;  %s1053_s0 = smov 0  }
  0x14 LB: > { %1333 = sst [smem:[#allocation18_spill]] %s980_s27  ;;  %s1074_s30 = sadd.s32 4294967295, %s992_s0   ;;  %s992_s0 = sphi %s1053_s0, %s27_s0   ;;  %s988_s29 = sphi %s1051_s29, %s1357_s29   ;;  %s984_s28 = sphi %s1049_s28, %s1356_s28   ;;  %s980_s27 = sphi %s1047_s27, %s1352_s27   ;;  %s976_s26 = sphi %s1045_s26, %s1355_s26   ;;  %s972_s25 = sphi %s1043_s25, %s1354_s25  }
  0x15   : > { %s667_s5 = sadd.s32 4294967294, %s992_s0   ;;  %s46_s6 = sadd.s32 1, %s988_s29 }
  0x16   : > { %s55_s7 = sadd.s32 1, %s980_s27  ;;  %p48_p3 = scmp.ge.s32.totalorder %s46_s6, 2 }
  0x17   : > { %p62_p4 = scmp.ne.s32.totalorder %s980_s27, %s976_s26  ;;  %p63_p5 = scmp.eq.s32.totalorder %s992_s0, 0 }
  0x18   : > { %p68_p6 = scmp.ne.s32.totalorder %s976_s26, %s972_s25  ;;  %s1359_s6 = smov (%p48_p3, %s46_s6), 0 }
  0x19   : > { %1334 = sst [smem:[#allocation19_spill]] %s1359_s6  ;;  %p1086_p7 = por %p63_p5, %p62_p4 }
  0x1a   : > { %p69_p8 = scmp.eq.s32.totalorder %s1074_s30, 0  ;;  %s50_s9 = ssub.s32 %s988_s29, %s1359_s6 }
  0x1b   : > { %p150_p9 = scmp.eq.s32.totalorder %s1074_s30, 1  ;;  %p53_p10 = scmp.eq.s32.totalorder %s50_s9, 0 }
  0x1c   : > { %p1094_p11 = por %p69_p8, %p68_p6  ;;  %p156_p13 = scmp.eq.s32.totalorder %s667_s5, 1 }
  0x1d   : > { %p1098_p12 = por %p150_p9, %p62_p4  ;;  %p738_p2 = scmp.lt.s32.totalorder %s992_s0, 2 }
  0x1e   : > { %s1336_s10 = scalar_select %p1094_p11, 1, 0 }
  0x1f   : > { %s1337_s11 = scalar_select %p1098_p12, 1, 0 }
  0x20   : > { %s1103_s12 = scalar_select %p53_p10, %s980_s27, %s55_s7  }
  0x21   : > { %p1105_p0 = por %p156_p13, %p68_p6  ;;  %s1112_s14 = sand.u32 1, %s980_s27  }
  0x22   : > { %1338 = sst [smem:[#allocation20_spill]] %s1103_s12  ;;  %s195_s15 = sand.u32 1, %s992_s0  }
  0x23   : > { %s1339_s13 = scalar_select %p1105_p0, 1, 0 }
  0x24   : > { %s672_s16 = sshll.u32 %s1112_s14, 4  ;;  %p1118_p3 = pnand %p738_p2, %p1086_p7 }
  0x25   : > { %s688_s18 = sshll.u32 %s988_s29, 8  ;;  %s1341_s2 = sld [smem:[#allocation21_spill]] }
  0x26   : > { %s1340_s17 = scalar_select %p1118_p3, 1, 0 }
  0x27   : > { %s199_s22 = scalar_lea.vmem [#allocation10], %s672_s16  ;;  %s1134_s24 = scalar_lea.sflag [#allocation11], %s195_s15 }
  0x28   : > { %s208_s23 = sshll.u32 %s199_s22, 4  ;;  %p1140_p5 = pneg %p1118_p3  ;;  %s1132_s23 = int_to_ptr.vmem [resolvable:$true] %s208_s23 }
  0x2b   : > { %s1128_s21 = scalar_lea.hbm %s1341_s2, %s688_s18  ;;  %s819_s19 = scalar_lea.hbm %s1341_s2, 512 }
  0x2c   : > { %s814_s5 = scalar_lea.hbm %s1128_s21, 256  ;;  %p820_p8 = scmp.lt.u32.totalorder %s1128_s21, %s1341_s2 }
  0x2d   : > { %p815_p4 = scmp.ne.s32.totalorder %s1128_s21, %s814_s5  ;;  %p821_p9 = scmp.lt.u32.totalorder %s819_s19, %s814_s5 }
  0x2e   : > { %p823_p13 = scmp.lt.u32.totalorder %s814_s5, %s1128_s21 }
  0x2f   : > { %p817_p6 = pnand %p1140_p5, %p815_p4  ;;  %p822_p10 = por %p821_p9, %p820_p8 }
  0x31   : > { %p818_p7 = pneg %p817_p6  ;;  %p824_p2 = por %p823_p13, %p822_p10 }
  0x33   : > { %p825_p1 = pnand %p824_p2, %p818_p7 }
  0x35   : > { %828 = shalt.err (!%p825_p1)
}
  0x36   : > { %s829_s15 = scalar_lea.vmem %s1132_s23, 256  ;;  %s995_s8 = smov [#allocation10]  }
  0x37   : > { %p830_p4 = scmp.ne.s32.totalorder %s1132_s23, %s829_s15  ;;  %s834_s9 = sshll.u32 %s995_s8, 4  ;;  %s835_s9 = int_to_ptr.vmem [resolvable:$false] %s834_s9 }
  0x38   : > { %s836_s20 = scalar_lea.vmem %s835_s9, 512  ;;  %p837_p12 = scmp.lt.s32.totalorder %s1132_s23, %s835_s9 }
  0x39   : > { %p832_p6 = pnand %p830_p4, %p1140_p5  ;;  %p838_p11 = scmp.lt.s32.totalorder %s836_s20, %s829_s15 }
  0x3b   : > { %p833_p0 = pneg %p832_p6  ;;  %p839_p8 = por %p838_p11, %p837_p12 }
  0x3d   : > { %p840_p9 = pnand %p839_p8, %p833_p0 }
  0x3f   : > { %843 = shalt.err (!%p840_p9)
}
  0x40   : > { %s1329_s5 = smov 128   ;;  %s997_s19 = smov 8  }
  0x41   : > { %730 = dma.hbm_to_vmem [thread:$0]  (!%p1118_p3), %s1128_s21, 256, %s1132_s23, %s1134_s24, %s1329_s5, %s1329_s5, %s997_s19  }
  0x42   : > { %s1172_s8 = scalar_lea.hbm %s1323_s3, %s688_s18  ;;  %p678_p11 = scmp.ge.s32.totalorder %s992_s0, 1 }
  0x43   : > { %s222_s9 = scalar_lea.vmem [#allocation12], %s672_s16  ;;  %p239_p12 = scmp.lt.s32.totalorder %s992_s0, 3 }
  0x44   : > { %s231_s20 = sshll.u32 %s222_s9, 4  ;;  %s670_s6 = sshll.u32 %s1112_s14, 3  ;;  %s1189_s20 = int_to_ptr.vmem [resolvable:$true] %s231_s20 }
  0x45   : > { %p1178_p0 = pnand %p678_p11, %p239_p12  ;;  %s671_s12 = sshll.u32 %s988_s29, 7 }
  0x46   : > { %s1187_s23 = scalar_lea.hbm %s1321_s1, %s671_s12  ;;  %s180_s16 = scalar_lea.vmem [#allocation7], %s670_s6 }
  0x47   : > { %s1343_s2 = scalar_select %p1178_p0, 1, 0 }
  0x48   : > { %s188_s18 = sshll.u32 %s180_s16, 4  ;;  %s177_s22 = scalar_lea.sflag [#allocation8], %s1112_s14  ;;  %s189_s18 = int_to_ptr.vmem [resolvable:$true] %s188_s18 }
  0x49   : > { %s844_s15 = scalar_lea.hbm %s1187_s23, 128  ;;  %s849_s27 = scalar_lea.hbm %s1321_s1, 256 }
  0x4a   : > { %p845_p1 = scmp.ne.s32.totalorder %s1187_s23, %s844_s15  ;;  %p850_p13 = scmp.lt.u32.totalorder %s1187_s23, %s1321_s1 }
  0x4b   : > { %p851_p2 = scmp.lt.u32.totalorder %s849_s27, %s844_s15  ;;  %p853_p6 = scmp.lt.u32.totalorder %s844_s15, %s1187_s23 }
  0x4c   : > { %p847_p7 = pnand %p845_p1, %p1140_p5 }
  0x4d   : > { %p852_p4 = por %p851_p2, %p850_p13 }
  0x4e   : > { %p848_p10 = pneg %p847_p7 }
  0x4f   : > { %p854_p8 = por %p853_p6, %p852_p4 }
  0x51   : > { %p855_p9 = pnand %p854_p8, %p848_p10 }
  0x53   : > { %858 = shalt.err (!%p855_p9)
}
  0x54   : > { %s859_s6 = scalar_lea.vmem %s189_s18, 128  ;;  %s998_s14 = smov [#allocation7]  }
  0x55   : > { %p860_p11 = scmp.ne.s32.totalorder %s189_s18, %s859_s6  ;;  %s864_s16 = sshll.u32 %s998_s14, 4  ;;  %s865_s16 = int_to_ptr.vmem [resolvable:$false] %s864_s16 }
  0x56   : > { %s866_s5 = scalar_lea.vmem %s865_s16, 256  ;;  %p867_p7 = scmp.lt.s32.totalorder %s189_s18, %s865_s16 }
  0x57   : > { %p862_p12 = pnand %p860_p11, %p1140_p5  ;;  %p868_p0 = scmp.lt.s32.totalorder %s866_s5, %s859_s6 }
  0x59   : > { %p863_p1 = pneg %p862_p12  ;;  %p869_p3 = por %p868_p0, %p867_p7 }
  0x5b   : > { %p870_p2 = pnand %p869_p3, %p863_p1 }
  0x5d   : > { %873 = shalt.err (!%p870_p2)
}
  0x5e   : > { %p1344_p13 = scmp.ne.s32.totalorder %s1340_s17, 0  ;;  %s874_s15 = scalar_lea.hbm %s1172_s8, 256 }
  0x5f   : > { %p875_p10 = scmp.ne.s32.totalorder %s1172_s8, %s874_s15  ;;  %s879_s12 = scalar_lea.hbm %s1323_s3, 512 }
  0x60   : > { %727 = dma.hbm_to_vmem [thread:$0]  (!%p1344_p13), %s1187_s23, 128, %s189_s18, %s177_s22  }
  0x61   : > { %p877_p4 = pnand %p875_p10, %p1140_p5  ;;  %p880_p3 = scmp.lt.u32.totalorder %s1172_s8, %s1323_s3 }
  0x62   : > { %p881_p0 = scmp.lt.u32.totalorder %s879_s12, %s874_s15  ;;  %p883_p9 = scmp.lt.u32.totalorder %s874_s15, %s1172_s8 }
  0x63   : > { %p878_p6 = pneg %p877_p4 }
  0x64   : > { %p882_p8 = por %p881_p0, %p880_p3 }
  0x66   : > { %p884_p11 = por %p883_p9, %p882_p8 }
  0x68   : > { %p885_p12 = pnand %p884_p11, %p878_p6 }
  0x6a   : > { %888 = shalt.err (!%p885_p12)
}
  0x6b   : > { %s889_s23 = scalar_lea.vmem %s1189_s20, 256  ;;  %s999_s18 = smov [#allocation12]  }
  0x6c   : > { %p890_p1 = scmp.ne.s32.totalorder %s1189_s20, %s889_s23  ;;  %s894_s22 = sshll.u32 %s999_s18, 4  ;;  %s895_s22 = int_to_ptr.vmem [resolvable:$false] %s894_s22 }
  0x6d   : > { %s896_s14 = scalar_lea.vmem %s895_s22, 512  ;;  %p897_p10 = scmp.lt.s32.totalorder %s1189_s20, %s895_s22 }
  0x6e   : > { %p892_p7 = pnand %p890_p1, %p1140_p5  ;;  %p898_p4 = scmp.lt.s32.totalorder %s896_s14, %s889_s23 }
  0x70   : > { %p893_p2 = pneg %p892_p7  ;;  %p899_p3 = por %p898_p4, %p897_p10 }
  0x72   : > { %p900_p0 = pnand %p899_p3, %p893_p2 }
  0x74   : > { %903 = shalt.err (!%p900_p0)
}
  0x75   : > { %s1345_s16 = smov 128   ;;  %p1346_p5 = scmp.ne.s32.totalorder %s1343_s2, 0 }
  0x76   : > { %733 = dma.hbm_to_vmem [thread:$0]  (!%p1344_p13), %s1172_s8, 256, %s1189_s20, %s1134_s24, %s1345_s16, %s1345_s16, %s997_s19  }
  0x77   : > { %243 = sbr.rel (%p1346_p5) target bundleno = 953 (0x3b9), region = 32  ;;  %s1237_s7 = sand.u32 (!%p1346_p5), 1, %s976_s26  }
  0x78   : > { %s679_s5 = sshll.u32 (!%p1346_p5), %s1237_s7, 3  ;;  %s246_s15 = scalar_lea.sflag (!%p1346_p5), [#allocation8], %s1237_s7 }
  0x79   : > { %s249_s17 = scalar_lea.vmem (!%p1346_p5), [#allocation7], %s679_s5  ;;  %p1347_p6 = scmp.ne.s32.totalorder (!%p1346_p5), %s1336_s10, 0 }
  0x7e   : > { %959 = dma.done.wait (%p1347_p6), %s246_s15, 128  }
  0x7f   : > { %961 = vsyncadd (%p1347_p6), %s246_s15, 4294967168  ;;  %s254_s2 = sand.u32 1, %s1074_s30   ;;  %s680_s24 = sshll.u32 %s1237_s7, 4 }
  0x80   : > { %s255_s19 = scalar_lea.sflag [#allocation11], %s254_s2  ;;  %s258_s8 = scalar_lea.vmem [#allocation10], %s680_s24 }
  0x81   : > { %963 = dma.done.wait (%p1347_p6), %s255_s19, 512  }
  0x82   : > { %965 = vsyncadd (%p1347_p6), %s255_s19, 4294966784  ;;  %vm306_vm0 = vcmask 7168   ;;  %v1000_v0 = vmov 0.0|0.0   ;;  %v1001_v1 = vmov -inf   ;;  %v1002_v2 = vmov 0.0   ;;  %v311_v3 = vld [vmem:[%s258_s8] sm:$0xff] }
  0x83   : > { %710 = vmatprep.subr.bf16.mxu0 %v1000_v0  ;;  %307 = vst.msk [vmem:[#allocation2] sm:$0xff] %vm306_vm0, %v1001_v1  ;;  %308 = vst.msk [vmem:[#allocation3] sm:$0xff] %vm306_vm0, %v1002_v2  ;;  %713 = vmatprep.subr.bf16.mxu1 %v1000_v0  ;;  %vm1003_vm1 = vmmov 0   ;;  %v312_v4 = vld [vmem:[%s258_s8 + $0x8] sm:$0xff]  ;;  %s391_s30 = sld [smem:[#allocation6 + %s984_s28]]  ;;  %v387_v7 = vlaneseq  ;;  %vm398_vm4 = vcmask 130048  }
  0x84   : > { %700 = vmatprep.mubr.msk.f32.mxu0 %vm1003_vm1, %v1002_v2  ;;  %707 = vmatprep.mubr.msk.f32.mxu1 %vm1003_vm1, %v1002_v2  ;;  %v711_v5 = vpack.c.bf16 %v312_v4, %v311_v3  ;;  %v310_v6 = vld [vmem:[%s249_s17] sm:$0xff]  ;;  %v1004_v16 = vmov 0   ;;  %s267_s10 = scalar_lea.vmem [#allocation12], %s680_s24  ;;  %s685_s20 = sshll.u32 %s984_s28, 7 }
  0x85   : > { %v388_v8 = vand.u32 127, %v387_v7  ;;  %796 = vset.pattern.permute.xlu0 %v1004_v16  ;;  %797 = vset.pattern.permute.xlu1 %v1004_v16  ;;  %v313_v21 = vld [vmem:[%s267_s10] sm:$0xff]  ;;  %v314_v22 = vld [vmem:[%s267_s10 + $0x8] sm:$0xff]  ;;  %s299_s9 = scalar_lea.vmem [#allocation13], %s679_s5  ;;  %s1271_s6 = scalar_lea.hbm %s1324_s4, %s685_s20 }
  0x86   : > { %712 = vmatpush3.bf16.xpose.msra.mxu0 %v711_v5  ;;  %v714_v23 = vpack.c.bf16 %v314_v22, %v313_v21  ;;  %s534_s27 = sshll.u32 %s299_s9, 4  ;;  %s520_s23 = scalar_lea.sflag [#allocation9], %s1237_s7  ;;  %s1273_s27 = int_to_ptr.vmem [resolvable:$true] %s534_s27 }
  0x87   : > { %vm395_vm3 = vcmp.lt.s32.totalorder %v388_v8, 10  ;;  %s904_s18 = scalar_lea.vmem %s1273_s27, 128  ;;  %p1348_p8 = scmp.ne.s32.totalorder %s1337_s11, 0 }
  0x88   : > { %715 = vmatpush3.bf16.msra.mxu1 %v714_v23  ;;  %p905_p13 = scmp.ne.s32.totalorder %s1273_s27, %s904_s18  ;;  %s1005_s28 = smov [#allocation13]  }
  0x89   : > { %v392_v9 = vstv %s391_s30  ;;  %s908_s22 = sshll.u32 %s1005_s28, 4  ;;  %s909_s22 = int_to_ptr.vmem [resolvable:$false] %s908_s22 }
  0x8a   : > { %vm393_vm2 = vcmp.lt.s32.totalorder %v388_v8, %v392_v9  ;;  %v397_v17 = vld [vmem:[#allocation2] sm:$0xff]  ;;  %v414_v31 = vld [vmem:[#allocation3] sm:$0xff]  ;;  %p906_p9 = pnand %p905_p13, %p1348_p8  ;;  %s910_s14 = scalar_lea.vmem %s909_s22, 256 }
  0x8b   : > { %p911_p12 = scmp.lt.s32.totalorder %s1273_s27, %s909_s22  ;;  %p912_p1 = scmp.lt.s32.totalorder %s910_s14, %s904_s18 }
  0x8c   : > { %p907_p11 = pneg %p906_p9 }
  0x8d   : > { %701 = vmatmul.mubr.f32.vlgmr.msra.gmra.mrb[0].mxu0 %v310_v6  ;;  %p913_p7 = por %p912_p1, %p911_p12 }
  0x8f   : > { %p914_p2 = pnand %p913_p7, %p907_p11 }
 0x160   : > { %v381_v10 = vpop.f32.mrb[0].mxu0 }
 0x161   : > { %v385_v11 = vmul.f32 0.70710677, %v381_v10  ;;  %v702_v12 = vpop.f32.mrb[1].mxu0 }
 0x163   : > { %v394_v13 = vsel %vm393_vm2, %v385_v11, -1000000.0 }
 0x164   : > { %v396_v14 = vsel %vm395_vm3, %v394_v13, -inf }
 0x165   : > { %v399_v15 = vsel %vm398_vm4, %v396_v14, -inf }
 0x166   : > { %400 = vmax.xlane.f32.xlu0 %v399_v15 }
 0x1f3   : > { %v401_v18 = vpop.xlane.xlu0 %400 }
 0x1f4   : > { %v402_v19 = vmax.f32 %v397_v17, %v401_v18 }
 0x1f6   : > { %v403_v20 = vsub.f32 %v397_v17, %v402_v19  ;;  %504 = vst.msk [vmem:[#allocation2] sm:$0xff] %vm306_vm0, %v402_v19  ;;  %408 = vperm.xlu0 %796, %v402_v19  }
 0x1f8   : > { %v404_v29 = vmul.f32 1.442695, %v403_v20 }
 0x275   : > { %v409_v24 = vpop.permute.xlu0 %408 }
 0x276   : > { %v411_v25 = vsub.f32 %v396_v14, %v409_v24 }
 0x278   : > { %v412_v26 = vmul.f32 1.442695, %v411_v25 }
 0x27a   : > { %798 = vpow2.f32 %v412_v26 }
 0x27b   : > { %800 = vpow2.f32 %v404_v29 }
 0x284   : > { %v799_v27 = vpop.eup %798 }
 0x285   : > { %708 = vmatmul.mubr.msk.f32.vlgmr.msra.gmra.mrb[0].mxu1 %vm398_vm4, %v799_v27  ;;  %v416_v28 = vsel %vm398_vm4, %v799_v27, 0.0  ;;  %v801_v30 = vpop.eup %800 }
 0x286   : > { %417 = vadd.xlane.f32.xlu1 %v416_v28  ;;  %v415_v32 = vmul.f32 %v801_v30, %v414_v31 }
 0x297   : > { %425 = vperm.xlu1 %797, %v801_v30  }
 0x313   : > { %v418_v33 = vpop.xlane.xlu1 %417 }
 0x314   : > { %v419_v34 = vadd.f32 %v418_v33, %v415_v32 }
 0x316   : > { %421 = vst.msk [vmem:[#allocation3] sm:$0xff] %vm306_vm0, %v419_v34 }
 0x317   : > { %v426_v39 = vpop.permute.xlu1 %425 }
 0x318   : > { %v428_v40 = vmul.f32 0.0, %v426_v39 }
 0x31d   : > { %v508_v35 = vld [vmem:[#allocation3] sm:$0xff] }
 0x31e   : > { %802 = vrcp.f32 %v508_v35 }
 0x328   : > { %v803_v36 = vpop.eup %802 }
 0x329   : > { %514 = vperm.xlu1 %797, %v803_v36  }
 0x358   : > { %v498_v37 = vpop.f32.mrb[0].mxu1 }
 0x359   : > { %v709_v38 = vpop.f32.mrb[1].mxu1  ;;  %v502_v41 = vadd.f32 %v498_v37, %v428_v40 }
 0x3a8   : > { %v515_v42 = vpop.permute.xlu1 %514 }
 0x3a9   : > { %v517_v43 = vmul.f32 %v515_v42, %v502_v41 }
 0x3ab   : > { %518 = vst [vmem:[%s299_s9] sm:$0xff] %v517_v43 }
 0x3ac   : > { %917 = shalt.err (!%p914_p2)
}
 0x3ad   : > { %s918_s16 = scalar_lea.hbm %s1271_s6, 128  ;;  %s922_s15 = scalar_lea.hbm %s1324_s4, 256 }
 0x3ae   : > { %p919_p10 = scmp.ne.s32.totalorder %s1271_s6, %s918_s16  ;;  %p923_p0 = scmp.lt.u32.totalorder %s1271_s6, %s1324_s4 }
 0x3af   : > { %p924_p5 = scmp.lt.u32.totalorder %s922_s15, %s918_s16  ;;  %p926_p13 = scmp.lt.u32.totalorder %s918_s16, %s1271_s6 }
 0x3b0   : > { %p920_p4 = pnand %p919_p10, %p1348_p8 }
 0x3b1   : > { %p925_p6 = por %p924_p5, %p923_p0 }
 0x3b2   : > { %p921_p3 = pneg %p920_p4 }
 0x3b3   : > { %p927_p9 = por %p926_p13, %p925_p6 }
 0x3b5   : > { %p928_p11 = pnand %p927_p9, %p921_p3 }
 0x3b7   : > { %931 = shalt.err (!%p928_p11)
}
 0x3b8   : > { %722 = dma.vmem_to_hbm [thread:$0]  (%p1348_p8), %s1273_s27, 128, %s1271_s6, %s520_s23  }
 0x3b9 PF: > { %s546_s24 = sand.u32 1, %s972_s25   ;;  %p1349_p12 = scmp.ne.s32.totalorder %s1339_s13, 0 }
 0x3ba   : > { %p1350_p1 = scmp.ge.s32.totalorder %s992_s0, 2  ;;  %s547_s19 = scalar_lea.sflag [#allocation9], %s546_s24 }
 0x3bc   : > { %p735_p7 = pnand %p1350_p1, %p1349_p12 }
 0x3be   : > { %967 = dma.done.wait (!%p735_p7), %s547_s19, 128  }
 0x3bf   : > { %969 = vsyncadd (!%p735_p7), %s547_s19, 4294967168  ;;  %s27_s0 = sadd.s32 1, %s992_s0   ;;  %s1351_s8 = sld [smem:[#allocation18_spill]] }
 0x3c0   : > { %p24_p2 = scmp.ge.s32.totalorder %s27_s0, 4   ;;  %s1352_s27 = sld [smem:[#allocation20_spill]] }
 0x3c1   : > { %s1353_s11 = sld [smem:[#allocation19_spill]]  ;;  %s1354_s25 = smov %s976_s26 }
 0x3c2   : > { %s1356_s28 = smov %s988_s29  ;;  %26 = sbr.rel (!%p24_p2) target bundleno = 20 (0x14), region = 109 }
 0x3c5   : > { %s1355_s26 = smov %s1351_s8 }
 0x3c7   : > { %s1357_s29 = smov %s1353_s11 }
 0x3c9   :  { %552 = vsyncpa [#allocation8], 1 }
 0x3ca   :  { %554 = vsyncpa [#allocation8 + $0x1], 1 }
 0x3cb   :  { %555 = vsyncpa [#allocation11], 1 }
 0x3cc   :  { %557 = vsyncpa [#allocation11 + $0x1], 1 }
 0x3cd   :  { %558 = vsyncpa [#allocation9], 1 }
 0x3ce   :  { %560 = vsyncpa [#allocation9 + $0x1], 1 }

</bundles_post_ra>
